<compile_context>
chip_gen: v7x
topology: tpu7x:2x2x1
jax: 0.10.0
libtpu: 0.0.40
codegen_flags: <defaults>
</compile_context>

<pallas_src>
import functools

import jax
import jax.numpy as jnp
from jax import lax
from jax.experimental import pallas as pl
from jax.experimental.pallas import tpu as pltpu

_LANES = 128
_MAX_BLOCK_ROWS = 512  # (512, 128) f32 = 256 KiB per input per pipeline buffer


def _disc_loss_kernel(real_ref, fake_ref, out_ref, acc_ref, *,
                      n_real, n_fake, block_rows, acc_rows):
    i = pl.program_id(0)

    @pl.when(i == 0)
    def _init():
        acc_ref[...] = jnp.zeros_like(acc_ref)

    # Global element index of every slot in this tile (for tail masking).
    shape = (block_rows, _LANES)
    row = lax.broadcasted_iota(jnp.int32, shape, 0)
    lane = lax.broadcasted_iota(jnp.int32, shape, 1)
    idx = i * (block_rows * _LANES) + row * _LANES + lane

    real = real_ref[...].astype(jnp.float32)
    fake = fake_ref[...].astype(jnp.float32)

    # BCE(x, 1) = -log(x);  BCE(x, 0) = -log(1 - x).
    # PyTorch clamps the log term at -100 (per-element loss <= 100).
    neg_log_real = -jnp.maximum(jnp.log(real), -100.0)
    neg_log_fake = -jnp.maximum(jnp.log(1.0 - fake), -100.0)

    contrib = (jnp.where(idx < n_real, neg_log_real, 0.0) * jnp.float32(1.0 / n_real)
               + jnp.where(idx < n_fake, neg_log_fake, 0.0) * jnp.float32(1.0 / n_fake))

    # Fold (block_rows, 128) -> (acc_rows, 128) with VPU vreg adds only (the
    # reshape groups whole (8,128) vreg tiles, so no data movement), and keep a
    # running vector partial sum across grid steps.
    acc_ref[...] += contrib.reshape(block_rows // acc_rows, acc_rows, _LANES).sum(axis=0)

    @pl.when(i == pl.num_programs(0) - 1)
    def _finalize():
        # Single cross-lane reduce + scalar write in the epilogue only.
        out_ref[0, 0] = jnp.sum(acc_ref[...])


def _as_lane_rows(x):
    """Ravel x into a (rows, 128) slab in its natural dtype.

    This is a pure (free) reshape whenever x.size is a multiple of 128;
    otherwise the flat tail is padded once.  Pad / out-of-bounds elements are
    masked inside the kernel, so the pad value is irrelevant.
    """
    flat = jnp.ravel(x)
    n = int(flat.shape[0])
    rows = -(-n // _LANES)
    if rows * _LANES != n:
        flat = jnp.pad(flat, (0, rows * _LANES - n), constant_values=0.5)
    return flat.reshape(rows, _LANES), n


@jax.jit
def discriminator_loss(real_output, fake_output):
    real2d, n_real = _as_lane_rows(real_output)
    fake2d, n_fake = _as_lane_rows(fake_output)

    # One grid covers both inputs.  In GAN use real/fake outputs always have
    # identical shapes, so no copy happens here; if they ever differ, the
    # smaller slab is row-padded (masked in-kernel).
    rows = max(real2d.shape[0], fake2d.shape[0])
    if real2d.shape[0] != rows:
        real2d = jnp.pad(real2d, ((0, rows - real2d.shape[0]), (0, 0)),
                         constant_values=0.5)
    if fake2d.shape[0] != rows:
        fake2d = jnp.pad(fake2d, ((0, rows - fake2d.shape[0]), (0, 0)),
                         constant_values=0.5)

    # Block sizing: stream <=512-row tiles; small inputs use a single
    # full-extent block (legal even when rows % 8 != 0).
    block_rows = _MAX_BLOCK_ROWS if rows > _MAX_BLOCK_ROWS else rows
    acc_rows = 8 if block_rows % 8 == 0 else block_rows
    steps = pl.cdiv(rows, block_rows)

    kernel = functools.partial(
        _disc_loss_kernel,
        n_real=n_real,
        n_fake=n_fake,
        block_rows=block_rows,
        acc_rows=acc_rows,
    )

    bytes_accessed = int(real2d.size * real2d.dtype.itemsize
                         + fake2d.size * fake2d.dtype.itemsize + 4)
    cost = pl.CostEstimate(
        flops=8 * (n_real + n_fake),
        transcendentals=n_real + n_fake,
        bytes_accessed=bytes_accessed,
    )

    # TODO(synk): on v7x, if the per-element log makes this EUP-bound, add a
    # leading 2-way "parallel" grid axis so each TensorCore reduces half the rows.
    out = pl.pallas_call(
        kernel,
        out_shape=jax.ShapeDtypeStruct((1, 1), jnp.float32),
        grid_spec=pltpu.PrefetchScalarGridSpec(
            num_scalar_prefetch=0,
            grid=(steps,),
            in_specs=[
                pl.BlockSpec((block_rows, _LANES), lambda i: (i, 0)),
                pl.BlockSpec((block_rows, _LANES), lambda i: (i, 0)),
            ],
            out_specs=pl.BlockSpec(memory_space=pltpu.SMEM),
            scratch_shapes=[pltpu.VMEM((acc_rows, _LANES), jnp.float32)],
        ),
        compiler_params=pltpu.CompilerParams(
            dimension_semantics=("arbitrary",),
        ),
        cost_estimate=cost,
    )(real2d, fake2d)
    return out[0, 0]


def _reference(real_output, fake_output):
    real = real_output.astype(jnp.float32)
    fake = fake_output.astype(jnp.float32)
    real_loss = jnp.mean(-jnp.maximum(jnp.log(real), -100.0))
    fake_loss = jnp.mean(-jnp.maximum(jnp.log(1.0 - fake), -100.0))
    return real_loss + fake_loss


def _check(shape, key):
    k_real, k_fake = jax.random.split(key)
    real_output = jax.random.uniform(
        k_real, shape, minval=0.01, maxval=0.99, dtype=jnp.float32)
    fake_output = jax.random.uniform(
        k_fake, shape, minval=0.01, maxval=0.99, dtype=jnp.float32)
    loss = discriminator_loss(real_output, fake_output)
    jax.block_until_ready(loss)
    ref = _reference(real_output, fake_output)
    assert jnp.allclose(loss, ref, rtol=1e-4, atol=1e-5), (shape, loss, ref)
    return loss


if __name__ == "__main__":
    key = jax.random.PRNGKey(0)
    k0, k1, k2 = jax.random.split(key, 3)

    # Primary: PatchGAN-style discriminator output, NCHW (batch=2, C=1, 16x16).
    _check((2, 1, 16, 16), k0)
    # Non-128-multiple element count -> exercises in-kernel tail masking.
    _check((3, 1, 30, 30), k1)
    # Larger input -> exercises multi-step grid + partial edge block.
    _check((4, 1, 128, 130), k2)

    print("KERNEL_OK")
</pallas_src>

<mosaic_0001>
module attributes {stable_mosaic.version = 11 : i64} {
  func.func @_disc_loss_kernel(%arg0: i32, %arg1: memref<4x128xf32, #tpu.memory_space<vmem>>, %arg2: memref<4x128xf32, #tpu.memory_space<vmem>>, %arg3: memref<1x1xf32, #tpu.memory_space<smem>>, %arg4: memref<4x128xf32, #tpu.memory_space<vmem>>) attributes {dimension_semantics = [#tpu.dimension_semantics<arbitrary>], iteration_bounds = array<i64: 1>, scalar_prefetch = 0 : i64, scratch_operands = 1 : i64, tpu.core_type = #tpu.core_type<tc>, window_params = [{transform_indices = @transform_0, window_bounds = array<i64: 4, 128>}, {transform_indices = @transform_1, window_bounds = array<i64: 4, 128>}, {transform_indices = @transform_2, window_bounds = array<i64: 1, 1>}]} {
    %c0_i32 = arith.constant 0 : i32
    %0 = arith.cmpi eq, %arg0, %c0_i32 : i32
    %1 = arith.extui %0 : i1 to i32
    %c0_i32_0 = arith.constant 0 : i32
    %2 = arith.cmpi ne, %1, %c0_i32_0 : i32
    scf.if %2 {
      %cst_21 = arith.constant 0.000000e+00 : f32
      %46 = vector.broadcast %cst_21 : f32 to vector<4x128xf32>
      %c0_22 = arith.constant 0 : index
      %c0_23 = arith.constant 0 : index
      %47 = vector.load %arg4[%c0_22, %c0_23] : memref<4x128xf32, #tpu.memory_space<vmem>>, vector<4x128xf32>
      tpu.vector_store %arg4[%c0_22, %c0_23], %46 {strides = array<i32>} : memref<4x128xf32, #tpu.memory_space<vmem>>, vector<4x128xf32>,
    } else {
    }
    %3 = tpu.iota {dimensions = array<i32: 0>} : vector<4x128xi32>
    %4 = tpu.iota {dimensions = array<i32: 1>} : vector<4x128xi32>
    %c512_i32 = arith.constant 512 : i32
    %5 = arith.muli %arg0, %c512_i32 : i32
    %c128_i32 = arith.constant 128 : i32
    %6 = vector.broadcast %c128_i32 : i32 to vector<4x128xi32>
    %7 = arith.muli %3, %6 : vector<4x128xi32>
    %8 = vector.broadcast %5 : i32 to vector<4x128xi32>
    %9 = arith.addi %8, %7 : vector<4x128xi32>
    %10 = arith.addi %9, %4 : vector<4x128xi32>
    %c0 = arith.constant 0 : index
    %c0_1 = arith.constant 0 : index
    %11 = vector.load %arg1[%c0, %c0_1] : memref<4x128xf32, #tpu.memory_space<vmem>>, vector<4x128xf32>
    %c0_2 = arith.constant 0 : index
    %c0_3 = arith.constant 0 : index
    %12 = vector.load %arg2[%c0_2, %c0_3] : memref<4x128xf32, #tpu.memory_space<vmem>>, vector<4x128xf32>
    %13 = math.log %11 : vector<4x128xf32>
    %cst = arith.constant -1.000000e+02 : f32
    %14 = vector.broadcast %cst : f32 to vector<4x128xf32>
    %15 = arith.maximumf %13, %14 : vector<4x128xf32>
    %cst_4 = arith.constant 0.000000e+00 : f32
    %16 = vector.broadcast %cst_4 : f32 to vector<4x128xf32>
    %17 = arith.subf %16, %15 : vector<4x128xf32>
    %cst_5 = arith.constant 1.000000e+00 : f32
    %18 = vector.broadcast %cst_5 : f32 to vector<4x128xf32>
    %19 = arith.subf %18, %12 : vector<4x128xf32>
    %20 = math.log %19 : vector<4x128xf32>
    %cst_6 = arith.constant -1.000000e+02 : f32
    %21 = vector.broadcast %cst_6 : f32 to vector<4x128xf32>
    %22 = arith.maximumf %20, %21 : vector<4x128xf32>
    %cst_7 = arith.constant 0.000000e+00 : f32
    %23 = vector.broadcast %cst_7 : f32 to vector<4x128xf32>
    %24 = arith.subf %23, %22 : vector<4x128xf32>
    %c512_i32_8 = arith.constant 512 : i32
    %25 = vector.broadcast %c512_i32_8 : i32 to vector<4x128xi32>
    %26 = arith.cmpi slt, %10, %25 : vector<4x128xi32>
    %cst_9 = arith.constant 0.000000e+00 : f32
    %27 = vector.broadcast %cst_9 : f32 to vector<4x128xf32>
    %28 = arith.select %26, %17, %27 : vector<4x128xi1>, vector<4x128xf32>
    %cst_10 = arith.constant 0.001953125 : f32
    %29 = vector.broadcast %cst_10 : f32 to vector<4x128xf32>
    %30 = arith.mulf %28, %29 : vector<4x128xf32>
    %c512_i32_11 = arith.constant 512 : i32
    %31 = vector.broadcast %c512_i32_11 : i32 to vector<4x128xi32>
    %32 = arith.cmpi slt, %10, %31 : vector<4x128xi32>
    %cst_12 = arith.constant 0.000000e+00 : f32
    %33 = vector.broadcast %cst_12 : f32 to vector<4x128xf32>
    %34 = arith.select %32, %24, %33 : vector<4x128xi1>, vector<4x128xf32>
    %cst_13 = arith.constant 0.001953125 : f32
    %35 = vector.broadcast %cst_13 : f32 to vector<4x128xf32>
    %36 = arith.mulf %34, %35 : vector<4x128xf32>
    %37 = arith.addf %30, %36 : vector<4x128xf32>
    %c0_14 = arith.constant 0 : index
    %c0_15 = arith.constant 0 : index
    %38 = vector.load %arg4[%c0_14, %c0_15] : memref<4x128xf32, #tpu.memory_space<vmem>>, vector<4x128xf32>
    %39 = vector.shape_cast %37 : vector<4x128xf32> to vector<1x4x128xf32>
    %cst_16 = arith.constant dense<0.000000e+00> : vector<4x128xf32>
    %40 = vector.multi_reduction <add>, %39, %cst_16 [0] : vector<1x4x128xf32> to vector<4x128xf32>
    %41 = arith.addf %38, %40 : vector<4x128xf32>
    %c0_17 = arith.constant 0 : index
    %c0_18 = arith.constant 0 : index
    %42 = vector.load %arg4[%c0_17, %c0_18] : memref<4x128xf32, #tpu.memory_space<vmem>>, vector<4x128xf32>
    tpu.vector_store %arg4[%c0_17, %c0_18], %41 {strides = array<i32>} : memref<4x128xf32, #tpu.memory_space<vmem>>, vector<4x128xf32>,
    %c0_i32_19 = arith.constant 0 : i32
    %43 = arith.cmpi eq, %arg0, %c0_i32_19 : i32
    %44 = arith.extui %43 : i1 to i32
    %c0_i32_20 = arith.constant 0 : i32
    %45 = arith.cmpi ne, %44, %c0_i32_20 : i32
    scf.if %45 {
      %c0_21 = arith.constant 0 : index
      %c0_22 = arith.constant 0 : index
      %46 = vector.load %arg4[%c0_21, %c0_22] : memref<4x128xf32, #tpu.memory_space<vmem>>, vector<4x128xf32>
      %47 = vector.shape_cast %46 : vector<4x128xf32> to vector<1x4x128xf32>
      %cst_23 = arith.constant dense<0.000000e+00> : vector<1xf32>
      %48 = vector.multi_reduction <add>, %47, %cst_23 [1, 2] : vector<1x4x128xf32> to vector<1xf32>
      %49 = vector.shape_cast %48 : vector<1xf32> to vector<1x1x1xf32>
      %50 = vector.extract %49[0, 0, 0] : f32 from vector<1x1x1xf32>
      %c0_24 = arith.constant 0 : index
      %c0_25 = arith.constant 0 : index
      %51 = memref.load %arg3[%c0_24, %c0_25] : memref<1x1xf32, #tpu.memory_space<smem>>
      memref.store %50, %arg3[%c0_24, %c0_25] : memref<1x1xf32, #tpu.memory_space<smem>>
    } else {
    }
    return
  }
  func.func @transform_0(%arg0: i32) -> (i32, i32) {
    %c0_i32 = arith.constant 0 : i32
    %c0_i32_0 = arith.constant 0 : i32
    return %arg0, %c0_i32 : i32, i32
  }
  func.func @transform_1(%arg0: i32) -> (i32, i32) {
    %c0_i32 = arith.constant 0 : i32
    %c0_i32_0 = arith.constant 0 : i32
    return %arg0, %c0_i32 : i32, i32
  }
  func.func @transform_2(%arg0: i32) -> (i32, i32) {
    %c0_i32 = arith.constant 0 : i32
    %c0_i32_0 = arith.constant 0 : i32
    %c0_i32_1 = arith.constant 0 : i32
    return %c0_i32, %c0_i32_0 : i32, i32
  }
}

</mosaic_0001>

<bundles_post_ra>
// kernel: discriminator_loss.1
= control target key start
LH: loop header
LB: loop body
LE: loop exit
PB: predicated region body
PF: predicated region fallthrough
CT: control target
= control target key end

     0   :  { %v17_v0 = vlaneseq  ;;  %v97_v3 = vmov 0.0   ;;  %s132_s0 = inlined_call_operand.vmem [shape: f32[4,128], index: 0, kind: input, shape index: {}]   ;;  %s133_s1 = inlined_call_operand.vmem [shape: f32[4,128], index: 1, kind: input, shape index: {}]   ;;  %s134_s2 = inlined_call_operand.hbm [shape: f32[1,1], index: 2, kind: output, shape index: {}]  }
   0x1   :  { %v26_v1 = vld [vmem:[%s132_s0] sm:$0xf]  ;;  %16 = vst [vmem:[#allocation2] sm:$0xf] %v97_v3 }
   0x2   :  { %v27_v2 = vld [vmem:[%s133_s1] sm:$0xf]  ;;  %81 = vlog2.f32 %v26_v1 }
   0x3   :  { %v32_v4 = vsub.f32 1.0, %v27_v2 }
   0x4   :  { %7 = vsyncpa [#allocation4], 0  ;;  %v18_v5 = vshrl.u32 %v17_v0, 7  ;;  %v20_v6 = vand.u32 127, %v17_v0  ;;  %vm51_vm1 = vcmask 1043456   ;;  %s85_s14 = scalar_lea.hbm %s134_s2, 16 }
   0x5   :  { %83 = vlog2.f32 %v32_v4  ;;  %p86_p0 = scmp.ne.s32.totalorder %s134_s2, %s85_s14  ;;  %p89_p1 = scmp.lt.u32.totalorder %s85_s14, %s134_s2 }
   0x6   :  { %v22_v7 = vmul.u32 128, %v18_v5 }
   0x7   :  { %p91_p2 = pnand %p89_p1, %p86_p0 }
   0x8   :  { %v25_v9 = vadd.s32 %v22_v7, %v20_v6  ;;  %v43_v21 = vld [vmem:[#allocation2] sm:$0xf] }
   0xa   :  { %vm37_vm0 = vcmp.lt.s32.totalorder %v25_v9, 512 }
   0xc   :  { %v82_v8 = vpop.eup %81 }
   0xd   :  { %v29_v10 = vmul.f32 0.6931472, %v82_v8 }
   0xf   :  { %v84_v11 = vpop.eup %83  ;;  %v30_v12 = vmax.f32 %v29_v10, -100.0 }
  0x10   :  { %v34_v13 = vmul.f32 0.6931472, %v84_v11 }
  0x11   :  { %v31_v14 = vsub.f32 0.0, %v30_v12 }
  0x12   :  { %v35_v15 = vmax.f32 %v34_v13, -100.0 }
  0x13   :  { %v38_v17 = vsel %vm37_vm0, %v31_v14, 0.0 }
  0x14   :  { %v36_v16 = vsub.f32 0.0, %v35_v15  ;;  %v39_v18 = vmul.f32 0.001953125, %v38_v17 }
  0x16   :  { %v40_v19 = vsel %vm37_vm0, %v36_v16, 0.0 }
  0x17   :  { %v41_v20 = vmul.f32 0.001953125, %v40_v19 }
  0x19   :  { %v42_v22 = vadd.f32 %v41_v20, %v39_v18 }
  0x1b   :  { %v45_v23 = vadd.f32 %v43_v21, %v42_v22 }
  0x1d   :  { %46 = vst [vmem:[#allocation2] sm:$0xf] %v45_v23 }
  0x24   :  { %v50_v24 = vld [vmem:[#allocation2] sm:$0xf] }
  0x25   :  { %v52_v25 = vsel %vm51_vm1, %v50_v24, 0.0 }
  0x26   :  { %53 = vadd.xlane.f32.xlu0 %v52_v25 }
  0xb3   :  { %v54_v26 = vpop.xlane.xlu0 %53 }
  0xb4   :  { %v55_v27 = vrot.slane %v54_v26, 4 }
  0xb6   :  { %v56_v28 = vadd.f32 %v55_v27, %v54_v26 }
  0xb8   :  { %v57_v29 = vrot.slane %v56_v28, 2 }
  0xba   :  { %v58_v30 = vadd.f32 %v57_v29, %v56_v28 }
  0xbc   :  { %v59_v31 = vrot.slane %v58_v30, 1 }
  0xbe   :  { %v60_v32 = vadd.f32 %v59_v31, %v58_v30 }
  0xc0   :  { %77 = vpush %v60_v32 }
  0xf1   :  { %s78_s0 = spop %77 }
  0xf2   :  { %63 = sst [smem:[#allocation3]] %s78_s0 }
  0xf3   :  { %94 = shalt.err (!%p91_p2)
}
  0xf4   :  { %s98_s19 = smov [#allocation3]  }
  0xf5   :  { %71 = dma.smem_to_hbm %s98_s19, 16, %s134_s2, [#allocation4]  }
  0xf6   :  { %95 = dma.done.wait [#allocation4], 16  }
  0xf7   :  { %96 = vsyncadd [#allocation4], 4294967280 }
  0xf8   :  { %75 = sfence }
  0xf9   :  { %76 = vsyncpa [#allocation4], 1 }

</bundles_post_ra>
